<compile_context>
chip_gen: v7x
topology: tpu7x:2x2x1
jax: 0.10.0
libtpu: 0.0.40
codegen_flags: <defaults>
</compile_context>

<pallas_src>
import functools

import jax
import jax.numpy as jnp
from jax import lax
from jax.experimental import pallas as pl
from jax.experimental.pallas import tpu as pltpu

LANES = 128
SUBLANES = 8


def _floss_kernel(yp_ref, yt_ref, out_ref, acc_ref, *,
                  gamma, weight, total, tile_rows, blocks_per_split,
                  needs_mask):
    i = pl.program_id(1)

    @pl.when(i == 0)
    def _():
        acc_ref[...] = jnp.zeros_like(acc_ref)

    yp = yp_ref[...].astype(jnp.float32)
    yt = yt_ref[...].astype(jnp.float32)

    # t2 = -weight * (y_pred - 1)^gamma * y_true * log(y_pred)
    if float(gamma) == int(gamma):
        powed = lax.integer_pow(yp - 1.0, int(gamma))   # VPU multiplies
    else:
        powed = jnp.power(yp - 1.0, gamma)              # non-integral gamma
    t2 = (-weight) * powed * yt * jnp.log(yp)

    if needs_mask:
        c = pl.program_id(0)
        base = (c * blocks_per_split + i) * (tile_rows * LANES)
        ridx = lax.broadcasted_iota(jnp.int32, (tile_rows, LANES), 0)
        cidx = lax.broadcasted_iota(jnp.int32, (tile_rows, LANES), 1)
        idx = base + ridx * LANES + cidx
        # select-after-compute: NaN/Inf in padded rows never leaks.
        t2 = jnp.where(idx < total, t2, 0.0)

    if tile_rows % SUBLANES == 0:
        # (tile_rows,128) -> (tile_rows//8, 8, 128); reduce the leading axis
        # with pure VPU vreg adds (no per-tile XLU scalar reduce).
        acc_ref[...] += jnp.sum(
            t2.reshape(tile_rows // SUBLANES, SUBLANES, LANES), axis=0)
    else:
        # tiny full-dim block (rows not a multiple of 8)
        acc_ref[0:1, :] += jnp.sum(t2, axis=0, keepdims=True)

    @pl.when(i == pl.num_programs(1) - 1)
    def _():
        out_ref[...] = acc_ref[...]


def floss(y_pred, y_true, gamma, weight=1.0, *, tile_rows=1024, num_splits=2):
    """Pallas implementation of FLoss.forward for NCHW inputs."""
    assert y_pred.shape == y_true.shape and y_pred.ndim == 4
    B, C, H, W = y_pred.shape
    n_norm = B * H * W                 # PyTorch denominator (no channels)
    total = B * C * H * W

    # Free (contiguous) reshape; only a tiny tail pad when total % 128 != 0.
    yp_flat = y_pred.reshape(-1)
    yt_flat = y_true.reshape(-1)
    rows = pl.cdiv(total, LANES)
    lane_pad = rows * LANES - total
    if lane_pad:
        yp_flat = jnp.pad(yp_flat, (0, lane_pad), constant_values=1)
        yt_flat = jnp.pad(yt_flat, (0, lane_pad), constant_values=0)
    yp2d = yp_flat.reshape(rows, LANES)
    yt2d = yt_flat.reshape(rows, LANES)

    # Clamp the block so its shape is always legal (multiple of 8 sublanes,
    # or the full dimension).
    tile_rows = min(tile_rows, rows)

    n_blocks = pl.cdiv(rows, tile_rows)
    num_splits = max(1, min(num_splits, n_blocks))
    bps = pl.cdiv(n_blocks, num_splits)               # blocks per split
    covered = num_splits * bps * tile_rows * LANES
    needs_mask = covered > total

    def in_map(c, i):
        # Clamp so overshoot blocks stay in bounds; the in-kernel mask zeroes
        # their contribution (it uses the un-clamped logical index).
        return (jnp.minimum(c * bps + i, n_blocks - 1), 0)

    kernel = functools.partial(
        _floss_kernel, gamma=float(gamma), weight=float(weight),
        total=total, tile_rows=tile_rows, blocks_per_split=bps,
        needs_mask=needs_mask)

    partials = pl.pallas_call(
        kernel,
        out_shape=jax.ShapeDtypeStruct((num_splits * SUBLANES, LANES),
                                       jnp.float32),
        grid_spec=pltpu.PrefetchScalarGridSpec(
            num_scalar_prefetch=0,
            grid=(num_splits, bps),
            in_specs=[
                pl.BlockSpec((tile_rows, LANES), in_map),
                pl.BlockSpec((tile_rows, LANES), in_map),
            ],
            out_specs=pl.BlockSpec((SUBLANES, LANES), lambda c, i: (c, 0)),
            scratch_shapes=[pltpu.VMEM((SUBLANES, LANES), jnp.float32)],
        ),
        compiler_params=pltpu.CompilerParams(
            dimension_semantics=("parallel", "arbitrary")),
    )(yp2d, yt2d)

    # Single cross-lane reduce of num_splits*8*128 partials in the wrapper.
    return (jnp.sum(partials) / n_norm).astype(jnp.float32)


def _reference(y_pred, y_true, gamma, weight=1.0):
    """Pure-JAX reference with the PyTorch module's semantics."""
    B, C, H, W = y_pred.shape
    n_norm = B * H * W
    if float(gamma) == int(gamma):
        powed = lax.integer_pow(y_pred - 1.0, int(gamma))
    else:
        powed = jnp.power(y_pred - 1.0, gamma)
    t2 = -weight * powed * y_true * jnp.log(y_pred)
    return jnp.sum(t2) / n_norm


if __name__ == "__main__":
    key = jax.random.PRNGKey(0)

    def make_inputs(k, shape):
        k1, k2 = jax.random.split(k)
        B, C, H, W = shape
        y_pred = jax.nn.sigmoid(jax.random.normal(k1, shape, jnp.float32))
        y_pred = jnp.clip(y_pred, 1e-6, 1.0 - 1e-6)
        labels = jax.random.randint(k2, (B, H, W), 0, C)
        y_true = jax.nn.one_hot(labels, C,
                                dtype=jnp.float32).transpose(0, 3, 1, 2)
        return y_pred, y_true

    k0, k1, k2 = jax.random.split(key, 3)

    # --- main case: matches the module's expected NCHW usage ----------------
    yp, yt = make_inputs(k0, (2, 4, 16, 16))
    out = jax.block_until_ready(floss(yp, yt, gamma=2.0, weight=1.0))
    ref = _reference(yp, yt, gamma=2.0, weight=1.0)
    assert jnp.allclose(out, ref, rtol=2e-5, atol=1e-5), (out, ref)

    # --- ragged shape: exercises lane pad, in-kernel mask, multi-block grid,
    #     2-way parallel split, block-index clamping, odd integer gamma ------
    yp, yt = make_inputs(k1, (2, 3, 33, 65))
    out = jax.block_until_ready(
        floss(yp, yt, gamma=3, weight=0.5, tile_rows=16, num_splits=2))
    ref = _reference(yp, yt, gamma=3, weight=0.5)
    assert jnp.allclose(out, ref, rtol=2e-5, atol=1e-5), (out, ref)

    # --- tiny shape: exercises the full-dim (<8 rows) fallback path ---------
    yp, yt = make_inputs(k2, (1, 3, 5, 7))
    out = jax.block_until_ready(floss(yp, yt, gamma=2.0, weight=1.0))
    ref = _reference(yp, yt, gamma=2.0, weight=1.0)
    assert jnp.allclose(out, ref, rtol=2e-5, atol=1e-5), (out, ref)

    print("KERNEL_OK")
</pallas_src>

<mosaic_0001>
module attributes {stable_mosaic.version = 11 : i64} {
  func.func @_floss_kernel(%arg0: i32, %arg1: i32, %arg2: memref<16x128xf32, #tpu.memory_space<vmem>>, %arg3: memref<16x128xf32, #tpu.memory_space<vmem>>, %arg4: memref<8x128xf32, #tpu.memory_space<vmem>>, %arg5: memref<8x128xf32, #tpu.memory_space<vmem>>) attributes {dimension_semantics = [#tpu.dimension_semantics<parallel>, #tpu.dimension_semantics<arbitrary>], iteration_bounds = array<i64: 1, 1>, scalar_prefetch = 0 : i64, scratch_operands = 1 : i64, tpu.core_type = #tpu.core_type<tc>, window_params = [{transform_indices = @transform_0, window_bounds = array<i64: 16, 128>}, {transform_indices = @transform_1, window_bounds = array<i64: 16, 128>}, {transform_indices = @transform_2, window_bounds = array<i64: 8, 128>}]} {
    %c0_i32 = arith.constant 0 : i32
    %0 = arith.cmpi eq, %arg1, %c0_i32 : i32
    %1 = arith.extui %0 : i1 to i32
    %c0_i32_0 = arith.constant 0 : i32
    %2 = arith.cmpi ne, %1, %c0_i32_0 : i32
    scf.if %2 {
      %cst_12 = arith.constant 0.000000e+00 : f32
      %21 = vector.broadcast %cst_12 : f32 to vector<8x128xf32>
      %c0_13 = arith.constant 0 : index
      %c0_14 = arith.constant 0 : index
      %22 = vector.load %arg5[%c0_13, %c0_14] : memref<8x128xf32, #tpu.memory_space<vmem>>, vector<8x128xf32>
      tpu.vector_store %arg5[%c0_13, %c0_14], %21 {strides = array<i32>} : memref<8x128xf32, #tpu.memory_space<vmem>>, vector<8x128xf32>,
    } else {
    }
    %c0 = arith.constant 0 : index
    %c0_1 = arith.constant 0 : index
    %3 = vector.load %arg2[%c0, %c0_1] : memref<16x128xf32, #tpu.memory_space<vmem>>, vector<16x128xf32>
    %c0_2 = arith.constant 0 : index
    %c0_3 = arith.constant 0 : index
    %4 = vector.load %arg3[%c0_2, %c0_3] : memref<16x128xf32, #tpu.memory_space<vmem>>, vector<16x128xf32>
    %cst = arith.constant 1.000000e+00 : f32
    %5 = vector.broadcast %cst : f32 to vector<16x128xf32>
    %6 = arith.subf %3, %5 : vector<16x128xf32>
    %7 = arith.mulf %6, %6 : vector<16x128xf32>
    %cst_4 = arith.constant -1.000000e+00 : f32
    %8 = vector.broadcast %cst_4 : f32 to vector<16x128xf32>
    %9 = arith.mulf %8, %7 : vector<16x128xf32>
    %10 = arith.mulf %9, %4 : vector<16x128xf32>
    %11 = math.log %3 : vector<16x128xf32>
    %12 = arith.mulf %10, %11 : vector<16x128xf32>
    %c0_5 = arith.constant 0 : index
    %c0_6 = arith.constant 0 : index
    %13 = vector.load %arg5[%c0_5, %c0_6] : memref<8x128xf32, #tpu.memory_space<vmem>>, vector<8x128xf32>
    %14 = vector.shape_cast %12 : vector<16x128xf32> to vector<2x8x128xf32>
    %cst_7 = arith.constant dense<0.000000e+00> : vector<8x128xf32>
    %15 = vector.multi_reduction <add>, %14, %cst_7 [0] : vector<2x8x128xf32> to vector<8x128xf32>
    %16 = arith.addf %13, %15 : vector<8x128xf32>
    %c0_8 = arith.constant 0 : index
    %c0_9 = arith.constant 0 : index
    %17 = vector.load %arg5[%c0_8, %c0_9] : memref<8x128xf32, #tpu.memory_space<vmem>>, vector<8x128xf32>
    tpu.vector_store %arg5[%c0_8, %c0_9], %16 {strides = array<i32>} : memref<8x128xf32, #tpu.memory_space<vmem>>, vector<8x128xf32>,
    %c0_i32_10 = arith.constant 0 : i32
    %18 = arith.cmpi eq, %arg1, %c0_i32_10 : i32
    %19 = arith.extui %18 : i1 to i32
    %c0_i32_11 = arith.constant 0 : i32
    %20 = arith.cmpi ne, %19, %c0_i32_11 : i32
    scf.if %20 {
      %c0_12 = arith.constant 0 : index
      %c0_13 = arith.constant 0 : index
      %21 = vector.load %arg5[%c0_12, %c0_13] : memref<8x128xf32, #tpu.memory_space<vmem>>, vector<8x128xf32>
      %c0_14 = arith.constant 0 : index
      %c0_15 = arith.constant 0 : index
      %22 = vector.load %arg4[%c0_14, %c0_15] : memref<8x128xf32, #tpu.memory_space<vmem>>, vector<8x128xf32>
      tpu.vector_store %arg4[%c0_14, %c0_15], %21 {strides = array<i32>} : memref<8x128xf32, #tpu.memory_space<vmem>>, vector<8x128xf32>,
    } else {
    }
    return
  }
  func.func @transform_0(%arg0: i32, %arg1: i32) -> (i32, i32) {
    %c1_i32 = arith.constant 1 : i32
    %0 = arith.muli %arg0, %c1_i32 : i32
    %1 = arith.addi %0, %arg1 : i32
    %c0_i32 = arith.constant 0 : i32
    %2 = arith.minsi %1, %c0_i32 : i32
    %c0_i32_0 = arith.constant 0 : i32
    %c0_i32_1 = arith.constant 0 : i32
    return %2, %c0_i32_0 : i32, i32
  }
  func.func @transform_1(%arg0: i32, %arg1: i32) -> (i32, i32) {
    %c1_i32 = arith.constant 1 : i32
    %0 = arith.muli %arg0, %c1_i32 : i32
    %1 = arith.addi %0, %arg1 : i32
    %c0_i32 = arith.constant 0 : i32
    %2 = arith.minsi %1, %c0_i32 : i32
    %c0_i32_0 = arith.constant 0 : i32
    %c0_i32_1 = arith.constant 0 : i32
    return %2, %c0_i32_0 : i32, i32
  }
  func.func @transform_2(%arg0: i32, %arg1: i32) -> (i32, i32) {
    %c0_i32 = arith.constant 0 : i32
    %c0_i32_0 = arith.constant 0 : i32
    return %arg0, %c0_i32 : i32, i32
  }
}

</mosaic_0001>

<bundles_post_ra>
// kernel: tpu_custom_call.1
= control target key start
LH: loop header
LB: loop body
LE: loop exit
PB: predicated region body
PF: predicated region fallthrough
CT: control target
= control target key end

     0   :  { %7 = vsyncpa [#allocation4], 0  ;;  %s251_s0 = inlined_call_operand.hbm [shape: f32[16,128], index: 0, kind: input, shape index: {}]   ;;  %s252_s1 = inlined_call_operand.hbm [shape: f32[16,128], index: 1, kind: input, shape index: {}]   ;;  %s253_s2 = inlined_call_operand.hbm [shape: f32[8,128], index: 2, kind: output, shape index: {}]  }
   0x1   :  { %8 = vsyncpa [#allocation7], 0 }
   0x2   :  { %9 = vsyncpa [#allocation5], 0  ;;  %s195_s9 = smov [#allocation3]   ;;  %s123_s13 = scalar_lea.hbm %s251_s0, 256 }
   0x3   :  { %s21_s10 = sshll.u32 %s195_s9, 4  ;;  %p124_p0 = scmp.ne.s32.totalorder %s251_s0, %s123_s13  ;;  %s22_s10 = int_to_ptr.vmem [resolvable:$true] %s21_s10 }
   0x4   :  { %p127_p1 = scmp.lt.u32.totalorder %s123_s13, %s251_s0 }
   0x6   :  { %p129_p2 = pnand %p127_p1, %p124_p0 }
   0x8   :  { %132 = shalt.err (!%p129_p2)
}
   0x9   :  { %s133_s18 = scalar_lea.vmem %s22_s10, 256  ;;  %p138_p4 = scmp.lt.s32.totalorder %s22_s10, %s22_s10 }
   0xa   :  { %p134_p3 = scmp.ne.s32.totalorder %s22_s10, %s133_s18  ;;  %p139_p5 = scmp.lt.s32.totalorder %s133_s18, %s133_s18 }
   0xc   :  { %p140_p6 = por %p139_p5, %p138_p4 }
   0xe   :  { %p141_p7 = pnand %p140_p6, %p134_p3 }
  0x10   :  { %144 = shalt.err (!%p141_p7)
}
  0x11   :  { %s196_s19 = smov 128   ;;  %s197_s20 = smov 8  }
  0x12   :  { %27 = dma.hbm_to_vmem [thread:$0]  %s251_s0, 256, %s22_s10, [#allocation4], %s196_s19, %s196_s19, %s197_s20  }
  0x13   :  { %s198_s23 = smov [#allocation6]   ;;  %s145_s27 = scalar_lea.hbm %s252_s1, 256 }
  0x14   :  { %s39_s24 = sshll.u32 %s198_s23, 4  ;;  %p146_p8 = scmp.ne.s32.totalorder %s252_s1, %s145_s27  ;;  %s40_s24 = int_to_ptr.vmem [resolvable:$true] %s39_s24 }
  0x15   :  { %p149_p9 = scmp.lt.u32.totalorder %s145_s27, %s252_s1 }
  0x17   :  { %p151_p10 = pnand %p149_p9, %p146_p8 }
  0x19   :  { %154 = shalt.err (!%p151_p10)
}
  0x1a   :  { %s155_s4 = scalar_lea.vmem %s40_s24, 256  ;;  %p160_p12 = scmp.lt.s32.totalorder %s40_s24, %s40_s24 }
  0x1b   :  { %p156_p11 = scmp.ne.s32.totalorder %s40_s24, %s155_s4  ;;  %p161_p13 = scmp.lt.s32.totalorder %s155_s4, %s155_s4 }
  0x1d   :  { %p162_p0 = por %p161_p13, %p160_p12 }
  0x1f   :  { %p163_p1 = pnand %p162_p0, %p156_p11 }
  0x21   :  { %166 = shalt.err (!%p163_p1)
}
  0x22   :  { %45 = dma.hbm_to_vmem [thread:$0]  %s252_s1, 256, %s40_s24, [#allocation7], %s196_s19, %s196_s19, %s197_s20  }
  0x23   :  { %189 = dma.done.wait [#allocation4], 256  }
  0x24   :  { %190 = vsyncadd [#allocation4], 4294967040 }
  0x25   :  { %191 = dma.done.wait [#allocation7], 256  }
  0x26   :  { %192 = vsyncadd [#allocation7], 4294967040  ;;  %v65_v0 = vld [vmem:[#allocation3] sm:$0xff]  ;;  %v66_v1 = vld [vmem:[#allocation3 + $0x8] sm:$0xff]  ;;  %s199_s1 = smov [#allocation8]  }
  0x27   :  { %v112_v2 = vadd.f32 -1.0, %v65_v0  ;;  %v113_v3 = vadd.f32 -1.0, %v66_v1  ;;  %119 = vlog2.f32 %v65_v0  ;;  %v67_v7 = vld [vmem:[#allocation6] sm:$0xff]  ;;  %v68_v9 = vld [vmem:[#allocation6 + $0x8] sm:$0xff]  ;;  %s98_s6 = sshll.u32 %s199_s1, 4  ;;  %s99_s6 = int_to_ptr.vmem [resolvable:$true] %s98_s6 }
  0x28   :  { %121 = vlog2.f32 %v66_v1  ;;  %s167_s7 = scalar_lea.vmem %s99_s6, 128  ;;  %p172_p3 = scmp.lt.s32.totalorder %s99_s6, %s99_s6 }
  0x29   :  { %v71_v4 = vmul.f32 %v112_v2, %v112_v2  ;;  %v72_v5 = vmul.f32 %v113_v3, %v113_v3  ;;  %p168_p2 = scmp.ne.s32.totalorder %s99_s6, %s167_s7  ;;  %p173_p4 = scmp.lt.s32.totalorder %s167_s7, %s167_s7 }
  0x2b   :  { %v73_v6 = vmul.f32 -1.0, %v71_v4  ;;  %v74_v8 = vmul.f32 -1.0, %v72_v5  ;;  %p174_p5 = por %p173_p4, %p172_p3 }
  0x2d   :  { %v75_v10 = vmul.f32 %v73_v6, %v67_v7  ;;  %v76_v12 = vmul.f32 %v74_v8, %v68_v9  ;;  %p175_p6 = pnand %p174_p5, %p168_p2 }
  0x31   :  { %v120_v11 = vpop.eup %119 }
  0x32   :  { %v122_v13 = vpop.eup %121  ;;  %v78_v14 = vmul.f32 0.6931472, %v120_v11 }
  0x33   :  { %v80_v15 = vmul.f32 0.6931472, %v122_v13 }
  0x34   :  { %v81_v16 = vmul.f32 %v78_v14, %v75_v10 }
  0x35   :  { %v82_v17 = vmul.f32 %v80_v15, %v76_v12 }
  0x37   :  { %v84_v18 = vadd.f32 %v82_v17, %v81_v16 }
  0x39   :  { %91 = vst [vmem:[#allocation8] sm:$0xff] %v84_v18 }
  0x3a   :  { %178 = shalt.err (!%p175_p6)
}
  0x3b   :  { %s179_s10 = scalar_lea.hbm %s253_s2, 128 }
  0x3c   :  { %p180_p7 = scmp.ne.s32.totalorder %s253_s2, %s179_s10  ;;  %p183_p8 = scmp.lt.u32.totalorder %s179_s10, %s253_s2 }
  0x3e   :  { %p185_p9 = pnand %p183_p8, %p180_p7 }
  0x40   :  { %188 = shalt.err (!%p185_p9)
}
  0x41   :  { %101 = dma.vmem_to_hbm [thread:$0]  %s99_s6, 128, %s253_s2, [#allocation5]  }
  0x42   :  { %193 = dma.done.wait [#allocation5], 128  }
  0x43   :  { %194 = vsyncadd [#allocation5], 4294967168 }
  0x44   :  { %105 = vsyncpa [#allocation4], 1 }
  0x45   :  { %106 = vsyncpa [#allocation7], 1 }
  0x46   :  { %107 = vsyncpa [#allocation5], 1 }

</bundles_post_ra>
